<compile_context>
chip_gen: v7x
topology: tpu7x:2x2x1
jax: 0.10.0
libtpu: 0.0.40
codegen_flags: <defaults>
</compile_context>

<pallas_src>
import jax
import jax.numpy as jnp
from jax.experimental import pallas as pl
from jax.experimental.pallas import tpu as pltpu


def _round_up(x, m):
    return ((x + m - 1) // m) * m


# -----------------------------------------------------------------------------
# Pallas kernel: fused Linear (x @ W + b) + LogSoftmax, tiled over rows and vocab.
# Grid = (M_pad // tm, V_pad // tv); the (tm, V_pad) output block is resident across
# the vocab ("arbitrary") axis and doubles as the logits accumulator, with an online
# max / log-sum-exp kept in (tm, 1) fp32 VMEM scratch.
# -----------------------------------------------------------------------------
def _mlm_head_kernel(x_ref, w_ref, b_ref, o_ref, m_acc, l_acc):
    # x_ref: (tm, D) bf16   -- resident across the V axis (index_map (i, k) -> (i, 0))
    # w_ref: (D, tv) bf16   -- streamed per vocab tile
    # b_ref: (1, tv) f32
    # o_ref: (tm, V_pad)    -- resident output / logits accumulator across the V axis
    # m_acc, l_acc: (tm, 1) f32 scratch -- online max / sum-exp state
    k = pl.program_id(1)
    tv = w_ref.shape[1]

    @pl.when(k == 0)
    def _init():
        m_acc[...] = jnp.full_like(m_acc, -jnp.inf)
        l_acc[...] = jnp.zeros_like(l_acc)

    # MXU matmul: bf16 inputs, fp32 accumulation.
    logits = jnp.dot(x_ref[...], w_ref[...], preferred_element_type=jnp.float32)
    logits = logits + b_ref[...]

    # Stash this vocab tile's raw logits into the resident output block
    # (lane-aligned dynamic slice: k * tv is a multiple of 128).
    col0 = pl.multiple_of(k * tv, tv)
    o_ref[:, pl.ds(col0, tv)] = logits.astype(o_ref.dtype)

    # Online log-sum-exp update (fp32).
    m_prev = m_acc[...]
    m_new = jnp.maximum(m_prev, jnp.max(logits, axis=-1, keepdims=True))
    l_acc[...] = l_acc[...] * jnp.exp(m_prev - m_new) + jnp.sum(
        jnp.exp(logits - m_new), axis=-1, keepdims=True)
    m_acc[...] = m_new

    # Finalize: subtract log-sum-exp from every stored logit.  Upcast to fp32,
    # subtract the fp32 LSE, cast once on store (accuracy is free: this pass is
    # vld/vst-slot bound, the VPU has slack).
    @pl.when(k == pl.num_programs(1) - 1)
    def _finalize():
        lse = m_acc[...] + jnp.log(l_acc[...])
        o_ref[...] = (o_ref[...].astype(jnp.float32) - lse).astype(o_ref.dtype)


def _mlm_vmem_limit_bytes(tm, tv, D, V_pad, out_dtype):
    out_bytes = jnp.dtype(out_dtype).itemsize
    buf = (2 * tm * V_pad * out_bytes   # double-buffered resident output block
           + 2 * D * tv * 2             # double-buffered bf16 weight tiles
           + 2 * tm * D * 2             # double-buffered bf16 x tiles
           + 2 * tv * 4                 # double-buffered f32 bias tiles
           + 2 * tm * 4)                # fp32 LSE scratch
    # Headroom for compiler-internal scratch; floor at the usual scoped default,
    # cap below physical VMEM on the larger-VMEM chips.
    return int(min(max(buf + (16 << 20), 32 << 20), 100 << 20))


def mlm_head_log_softmax(x2d, w, b, *, tm=256, tv=1024,
                         out_dtype=jnp.bfloat16, vmem_limit_bytes=None):
    """x2d: (M, D) f32, w: (D, V), b: (1, V)  ->  (M, V) log-probs in out_dtype."""
    M, D = x2d.shape
    V = w.shape[1]

    # Row tile: multiple of 16 (bf16 sublane packing), clamped to the row count,
    # then halved if that leaves only one row tile (keep both v7x TensorCores busy).
    tm = max(16, min(int(tm), _round_up(M, 16)))
    tm = _round_up(tm, 16)
    if M > 16 and _round_up(M, tm) // tm < 2:
        half = _round_up(max(16, tm // 2), 16)
        if _round_up(M, half) // half >= 2:
            tm = half

    # Vocab tile: multiple of 128, clamped to the (padded) vocab size.
    tv = max(128, min(int(tv), _round_up(V, 128)))
    tv = _round_up(tv, 128)

    M_pad = _round_up(M, tm)
    V_pad = _round_up(V, tv)

    if M_pad != M:
        x2d = jnp.pad(x2d, ((0, M_pad - M), (0, 0)))
    if V_pad != V:
        w = jnp.pad(w, ((0, 0), (0, V_pad - V)))
        # Padded vocab columns get a huge negative bias so exp() underflows to 0.
        b = jnp.pad(b, ((0, 0), (0, V_pad - V)), constant_values=-1e30)

    x_bf = x2d.astype(jnp.bfloat16)
    w_bf = w.astype(jnp.bfloat16)
    b_f32 = b.astype(jnp.float32)

    if vmem_limit_bytes is None:
        vmem_limit_bytes = _mlm_vmem_limit_bytes(tm, tv, D, V_pad, out_dtype)

    grid = (M_pad // tm, V_pad // tv)

    out = pl.pallas_call(
        _mlm_head_kernel,
        out_shape=jax.ShapeDtypeStruct((M_pad, V_pad), out_dtype),
        grid_spec=pltpu.PrefetchScalarGridSpec(
            num_scalar_prefetch=0,
            grid=grid,
            in_specs=[
                # x tile is re-used across all vocab tiles of the same row tile.
                pl.BlockSpec((tm, D), lambda i, k: (i, 0)),
                pl.BlockSpec((D, tv), lambda i, k: (0, k)),
                pl.BlockSpec((1, tv), lambda i, k: (0, k)),
            ],
            out_specs=pl.BlockSpec((tm, V_pad), lambda i, k: (i, 0)),
            scratch_shapes=[
                pltpu.VMEM((tm, 1), jnp.float32),   # running max
                pltpu.VMEM((tm, 1), jnp.float32),   # running sum(exp)
            ],
        ),
        compiler_params=pltpu.CompilerParams(
            dimension_semantics=("parallel", "arbitrary"),
            vmem_limit_bytes=vmem_limit_bytes,
        ),
    )(x_bf, w_bf, b_f32)

    return out[:M, :V]


# -----------------------------------------------------------------------------
# NSP head: 2-class linear + log-softmax, kept in plain JAX (lane-sparse on TPU).
# -----------------------------------------------------------------------------
def nsp_head_log_softmax(x, w, b):
    # NOTE: the reference module applies this head to every position (full (B, S, D)
    # hidden states); canonical BERT restricts it to the [CLS] token x[:, 0].
    # We keep the module's semantics.
    logits = jnp.einsum("bsd,dv->bsv", x, w) + b
    return jax.nn.log_softmax(logits, axis=-1)


# -----------------------------------------------------------------------------
# Deterministic BERT-style encoder (plain JAX glue; see TODO above).
# All matmuls run in bf16 with fp32 accumulation; norms / softmax stay fp32.
# -----------------------------------------------------------------------------
def _mm(a, b):
    return jnp.dot(a.astype(jnp.bfloat16), b.astype(jnp.bfloat16),
                   preferred_element_type=jnp.float32)


def _ein(eq, a, b):
    return jnp.einsum(eq, a.astype(jnp.bfloat16), b.astype(jnp.bfloat16),
                      preferred_element_type=jnp.float32)


def _layer_norm(x, g, beta, eps=1e-12):
    mu = jnp.mean(x, axis=-1, keepdims=True)
    var = jnp.mean((x - mu) ** 2, axis=-1, keepdims=True)
    return (x - mu) * jax.lax.rsqrt(var + eps) * g + beta


def bert_forward(params, tokens, segment_label, mask):
    B, S = tokens.shape
    D = params["tok_emb"].shape[1]
    H = params["n_heads"]
    dh = D // H

    h = (params["tok_emb"][tokens]
         + params["seg_emb"][segment_label]
         + params["pos_emb"][:S][None, :, :])
    h = _layer_norm(h, params["emb_ln_g"], params["emb_ln_b"])

    attn_bias = jnp.where(mask[:, None, None, :] > 0, 0.0, -1e9).astype(jnp.float32)

    for layer in params["layers"]:
        q = _mm(h, layer["wq"]) + layer["bq"]
        k = _mm(h, layer["wk"]) + layer["bk"]
        v = _mm(h, layer["wv"]) + layer["bv"]
        q = q.reshape(B, S, H, dh).transpose(0, 2, 1, 3)
        k = k.reshape(B, S, H, dh).transpose(0, 2, 1, 3)
        v = v.reshape(B, S, H, dh).transpose(0, 2, 1, 3)
        scores = _ein("bhqd,bhkd->bhqk", q, k) / jnp.sqrt(dh).astype(jnp.float32)
        scores = scores + attn_bias
        probs = jax.nn.softmax(scores, axis=-1)
        ctx = _ein("bhqk,bhkd->bhqd", probs, v)
        ctx = ctx.transpose(0, 2, 1, 3).reshape(B, S, D)
        attn_out = _mm(ctx, layer["wo"]) + layer["bo"]
        h = _layer_norm(h + attn_out, layer["ln1_g"], layer["ln1_b"])

        ff = jax.nn.gelu(_mm(h, layer["w1"]) + layer["b1"])
        ff = _mm(ff, layer["w2"]) + layer["b2"]
        h = _layer_norm(h + ff, layer["ln2_g"], layer["ln2_b"])
    return h


# -----------------------------------------------------------------------------
# Parameter construction (deterministic).
# -----------------------------------------------------------------------------
def make_params(key, *, vocab_size, d_model, n_layers, n_heads, d_ff, max_len):
    keys = iter(jax.random.split(key, 8 + 12 * n_layers + 4))

    def nrm(shape, scale=0.02):
        return (scale * jax.random.normal(next(keys), shape)).astype(jnp.float32)

    params = {
        "n_heads": n_heads,
        "tok_emb": nrm((vocab_size, d_model)),
        "seg_emb": nrm((3, d_model)),
        "pos_emb": nrm((max_len, d_model)),
        "emb_ln_g": jnp.ones((d_model,), jnp.float32),
        "emb_ln_b": jnp.zeros((d_model,), jnp.float32),
        "layers": [],
    }
    for _ in range(n_layers):
        params["layers"].append({
            "wq": nrm((d_model, d_model)), "bq": jnp.zeros((d_model,), jnp.float32),
            "wk": nrm((d_model, d_model)), "bk": jnp.zeros((d_model,), jnp.float32),
            "wv": nrm((d_model, d_model)), "bv": jnp.zeros((d_model,), jnp.float32),
            "wo": nrm((d_model, d_model)), "bo": jnp.zeros((d_model,), jnp.float32),
            "ln1_g": jnp.ones((d_model,), jnp.float32),
            "ln1_b": jnp.zeros((d_model,), jnp.float32),
            "w1": nrm((d_model, d_ff)), "b1": jnp.zeros((d_ff,), jnp.float32),
            "w2": nrm((d_ff, d_model)), "b2": jnp.zeros((d_model,), jnp.float32),
            "ln2_g": jnp.ones((d_model,), jnp.float32),
            "ln2_b": jnp.zeros((d_model,), jnp.float32),
        })
    # PyTorch nn.Linear stores W as (out, in); we keep the transposed (in, out)
    # layout so the kernel computes x @ W directly (same math as x @ W_pt.T + b).
    params["mlm_w"] = nrm((d_model, vocab_size), scale=0.05)
    params["mlm_b"] = nrm((1, vocab_size), scale=0.05)
    params["nsp_w"] = nrm((d_model, 2), scale=0.05)
    params["nsp_b"] = nrm((1, 2), scale=0.05)
    return params


# -----------------------------------------------------------------------------
# Full BERTLanguageModeling forward.
# -----------------------------------------------------------------------------
def bert_language_modeling(params, tokens, segment_label, mask,
                           *, tm=256, tv=1024, mlm_out_dtype=jnp.bfloat16):
    B, S = tokens.shape
    D = params["tok_emb"].shape[1]
    V = params["mlm_w"].shape[1]

    x = bert_forward(params, tokens, segment_label, mask)        # (B, S, D)
    x2d = x.reshape(B * S, D)

    mlm = mlm_head_log_softmax(x2d, params["mlm_w"], params["mlm_b"],
                               tm=tm, tv=tv, out_dtype=mlm_out_dtype)
    mlm = mlm.astype(jnp.float32)
    nsp = nsp_head_log_softmax(x, params["nsp_w"], params["nsp_b"])

    return mlm.reshape(B, S, V), nsp


if __name__ == "__main__":
    B, S = 2, 8
    D_MODEL = 32
    VOCAB = 256
    N_LAYERS = 2
    N_HEADS = 4
    D_FF = 64
    MAX_LEN = 64

    root = jax.random.PRNGKey(0)
    k_param, k_tok, k_seg, k_x = jax.random.split(root, 4)

    params = make_params(k_param, vocab_size=VOCAB, d_model=D_MODEL,
                         n_layers=N_LAYERS, n_heads=N_HEADS, d_ff=D_FF,
                         max_len=MAX_LEN)

    tokens = jax.random.randint(k_tok, (B, S), 0, VOCAB, dtype=jnp.int32)
    segment_label = jax.random.randint(k_seg, (B, S), 0, 3, dtype=jnp.int32)
    mask = jnp.ones((B, S), dtype=jnp.int32)

    mlm_logp, nsp_logp = bert_language_modeling(params, tokens, segment_label, mask)
    jax.block_until_ready((mlm_logp, nsp_logp))

    assert mlm_logp.shape == (B, S, VOCAB)
    assert nsp_logp.shape == (B, S, 2)
    # log-softmax sanity: probabilities sum to 1 along the last axis
    # (MLM log-probs are bf16-rounded, so allow a few % on the sum).
    assert bool(jnp.allclose(jnp.exp(mlm_logp).sum(-1), 1.0, atol=5e-2))
    assert bool(jnp.allclose(jnp.exp(nsp_logp).sum(-1), 1.0, atol=1e-3))
    assert bool(jnp.all(jnp.isfinite(mlm_logp))) and bool(jnp.all(jnp.isfinite(nsp_logp)))

    # Standalone checks of the Pallas MLM head vs. a plain-JAX reference using the
    # same bf16-cast inputs (fp32 accumulation), exercising multi-tile grids,
    # the online log-sum-exp, bf16/fp32 outputs, and the vocab-padding path.
    xh = jax.random.normal(k_x, (48, D_MODEL), jnp.float32)   # 3 row tiles at tm=16

    def ref_head(xv, wv, bv):
        logits = (xv.astype(jnp.bfloat16).astype(jnp.float32)
                  @ wv.astype(jnp.bfloat16).astype(jnp.float32)) + bv
        return jax.nn.log_softmax(logits, axis=-1)

    # (a) multiple row tiles and multiple vocab tiles, fp32 output
    #     (tm=16, tv=128 -> grid (3, 2)).
    got_a = mlm_head_log_softmax(xh, params["mlm_w"], params["mlm_b"],
                                 tm=16, tv=128, out_dtype=jnp.float32)
    ref_a = ref_head(xh, params["mlm_w"], params["mlm_b"])
    assert bool(jnp.allclose(got_a, ref_a, atol=2e-2, rtol=1e-2))

    # (b) vocab size not a multiple of the tile (exercises -1e30 bias padding),
    #     bf16 output with the fp32-upcast finalize path.
    w_odd = params["mlm_w"][:, :200]
    b_odd = params["mlm_b"][:, :200]
    got_b = mlm_head_log_softmax(xh, w_odd, b_odd, tm=16, tv=128,
                                 out_dtype=jnp.bfloat16).astype(jnp.float32)
    ref_b = ref_head(xh, w_odd, b_odd)
    assert got_b.shape == (48, 200)
    assert bool(jnp.allclose(got_b, ref_b, atol=3e-2, rtol=2e-2))

    jax.block_until_ready((got_a, got_b))
    print("KERNEL_OK")
</pallas_src>

<mosaic_0001>
module attributes {stable_mosaic.version = 11 : i64} {
  func.func @_mlm_head_kernel(%arg0: i32, %arg1: i32, %arg2: memref<16x32xbf16, #tpu.memory_space<vmem>>, %arg3: memref<32x256xbf16, #tpu.memory_space<vmem>>, %arg4: memref<1x256xf32, #tpu.memory_space<vmem>>, %arg5: memref<16x256xbf16, #tpu.memory_space<vmem>>, %arg6: memref<16x1xf32, #tpu.memory_space<vmem>>, %arg7: memref<16x1xf32, #tpu.memory_space<vmem>>) attributes {dimension_semantics = [#tpu.dimension_semantics<parallel>, #tpu.dimension_semantics<arbitrary>], iteration_bounds = array<i64: 1, 1>, scalar_prefetch = 0 : i64, scratch_operands = 2 : i64, tpu.core_type = #tpu.core_type<tc>, window_params = [{transform_indices = @transform_0, window_bounds = array<i64: 16, 32>}, {transform_indices = @transform_1, window_bounds = array<i64: 32, 256>}, {transform_indices = @transform_2, window_bounds = array<i64: 1, 256>}, {transform_indices = @transform_3, window_bounds = array<i64: 16, 256>}]} {
    %c0_i32 = arith.constant 0 : i32
    %0 = arith.cmpi eq, %arg1, %c0_i32 : i32
    %1 = arith.extui %0 : i1 to i32
    %c0_i32_0 = arith.constant 0 : i32
    %2 = arith.cmpi ne, %1, %c0_i32_0 : i32
    scf.if %2 {
      %cst_19 = arith.constant 0xFF800000 : f32
      %33 = vector.broadcast %cst_19 : f32 to vector<16x1xf32>
      %c0_20 = arith.constant 0 : index
      %c0_21 = arith.constant 0 : index
      %34 = vector.load %arg6[%c0_20, %c0_21] : memref<16x1xf32, #tpu.memory_space<vmem>>, vector<16x1xf32>
      tpu.vector_store %arg6[%c0_20, %c0_21], %33 {strides = array<i32>} : memref<16x1xf32, #tpu.memory_space<vmem>>, vector<16x1xf32>,
      %cst_22 = arith.constant 0.000000e+00 : f32
      %35 = vector.broadcast %cst_22 : f32 to vector<16x1xf32>
      %c0_23 = arith.constant 0 : index
      %c0_24 = arith.constant 0 : index
      %36 = vector.load %arg7[%c0_23, %c0_24] : memref<16x1xf32, #tpu.memory_space<vmem>>, vector<16x1xf32>
      tpu.vector_store %arg7[%c0_23, %c0_24], %35 {strides = array<i32>} : memref<16x1xf32, #tpu.memory_space<vmem>>, vector<16x1xf32>,
    } else {
    }
    %c0 = arith.constant 0 : index
    %c0_1 = arith.constant 0 : index
    %3 = vector.load %arg2[%c0, %c0_1] : memref<16x32xbf16, #tpu.memory_space<vmem>>, vector<16x32xbf16>
    %c0_2 = arith.constant 0 : index
    %c0_3 = arith.constant 0 : index
    %4 = vector.load %arg3[%c0_2, %c0_3] : memref<32x256xbf16, #tpu.memory_space<vmem>>, vector<32x256xbf16>
    %cst = arith.constant dense<0.000000e+00> : vector<16x256xf32>
    %5 = tpu.matmul %3, %4, %cst {dimension_numbers = #tpu.dot_dimension_numbers<[1], [0], [0], [1], [0, 0, 1, 1], [], []>} : vector<16x32xbf16>, vector<32x256xbf16>, vector<16x256xf32> -> vector<16x256xf32>
    %c0_4 = arith.constant 0 : index
    %c0_5 = arith.constant 0 : index
    %6 = vector.load %arg4[%c0_4, %c0_5] : memref<1x256xf32, #tpu.memory_space<vmem>>, vector<1x256xf32>
    %7 = vector.broadcast %6 : vector<1x256xf32> to vector<16x256xf32>
    %8 = arith.addf %5, %7 : vector<16x256xf32>
    %c256_i32 = arith.constant 256 : i32
    %9 = arith.muli %arg1, %c256_i32 : i32
    %10 = tpu.assume_multiple %9, 256 : i32
    %11 = arith.truncf %8 : vector<16x256xf32> to vector<16x256xbf16>
    %c0_6 = arith.constant 0 : index
    %12 = arith.index_cast %10 : i32 to index
    %13 = vector.load %arg5[%c0_6, %12] : memref<16x256xbf16, #tpu.memory_space<vmem>>, vector<16x256xbf16>
    tpu.vector_store %arg5[%c0_6, %12], %11 {strides = array<i32>} : memref<16x256xbf16, #tpu.memory_space<vmem>>, vector<16x256xbf16>,
    %c0_7 = arith.constant 0 : index
    %c0_8 = arith.constant 0 : index
    %14 = vector.load %arg6[%c0_7, %c0_8] : memref<16x1xf32, #tpu.memory_space<vmem>>, vector<16x1xf32>
    %cst_9 = arith.constant dense<0xFF800000> : vector<16xf32>
    %15 = vector.multi_reduction <maximumf>, %8, %cst_9 [1] : vector<16x256xf32> to vector<16xf32>
    %16 = vector.shape_cast %15 : vector<16xf32> to vector<16x1xf32>
    %17 = arith.maximumf %14, %16 : vector<16x1xf32>
    %c0_10 = arith.constant 0 : index
    %c0_11 = arith.constant 0 : index
    %18 = vector.load %arg7[%c0_10, %c0_11] : memref<16x1xf32, #tpu.memory_space<vmem>>, vector<16x1xf32>
    %19 = arith.subf %14, %17 : vector<16x1xf32>
    %20 = math.exp %19 : vector<16x1xf32>
    %21 = arith.mulf %18, %20 : vector<16x1xf32>
    %22 = vector.broadcast %17 : vector<16x1xf32> to vector<16x256xf32>
    %23 = arith.subf %8, %22 : vector<16x256xf32>
    %24 = math.exp %23 : vector<16x256xf32>
    %cst_12 = arith.constant dense<0.000000e+00> : vector<16xf32>
    %25 = vector.multi_reduction <add>, %24, %cst_12 [1] : vector<16x256xf32> to vector<16xf32>
    %26 = vector.shape_cast %25 : vector<16xf32> to vector<16x1xf32>
    %27 = arith.addf %21, %26 : vector<16x1xf32>
    %c0_13 = arith.constant 0 : index
    %c0_14 = arith.constant 0 : index
    %28 = vector.load %arg7[%c0_13, %c0_14] : memref<16x1xf32, #tpu.memory_space<vmem>>, vector<16x1xf32>
    tpu.vector_store %arg7[%c0_13, %c0_14], %27 {strides = array<i32>} : memref<16x1xf32, #tpu.memory_space<vmem>>, vector<16x1xf32>,
    %c0_15 = arith.constant 0 : index
    %c0_16 = arith.constant 0 : index
    %29 = vector.load %arg6[%c0_15, %c0_16] : memref<16x1xf32, #tpu.memory_space<vmem>>, vector<16x1xf32>
    tpu.vector_store %arg6[%c0_15, %c0_16], %17 {strides = array<i32>} : memref<16x1xf32, #tpu.memory_space<vmem>>, vector<16x1xf32>,
    %c0_i32_17 = arith.constant 0 : i32
    %30 = arith.cmpi eq, %arg1, %c0_i32_17 : i32
    %31 = arith.extui %30 : i1 to i32
    %c0_i32_18 = arith.constant 0 : i32
    %32 = arith.cmpi ne, %31, %c0_i32_18 : i32
    scf.if %32 {
      %c0_19 = arith.constant 0 : index
      %c0_20 = arith.constant 0 : index
      %33 = vector.load %arg6[%c0_19, %c0_20] : memref<16x1xf32, #tpu.memory_space<vmem>>, vector<16x1xf32>
      %c0_21 = arith.constant 0 : index
      %c0_22 = arith.constant 0 : index
      %34 = vector.load %arg7[%c0_21, %c0_22] : memref<16x1xf32, #tpu.memory_space<vmem>>, vector<16x1xf32>
      %35 = math.log %34 : vector<16x1xf32>
      %36 = arith.addf %33, %35 : vector<16x1xf32>
      %c0_23 = arith.constant 0 : index
      %c0_24 = arith.constant 0 : index
      %37 = vector.load %arg5[%c0_23, %c0_24] : memref<16x256xbf16, #tpu.memory_space<vmem>>, vector<16x256xbf16>
      %38 = arith.extf %37 : vector<16x256xbf16> to vector<16x256xf32>
      %39 = vector.broadcast %36 : vector<16x1xf32> to vector<16x256xf32>
      %40 = arith.subf %38, %39 : vector<16x256xf32>
      %41 = arith.truncf %40 : vector<16x256xf32> to vector<16x256xbf16>
      %c0_25 = arith.constant 0 : index
      %c0_26 = arith.constant 0 : index
      %42 = vector.load %arg5[%c0_25, %c0_26] : memref<16x256xbf16, #tpu.memory_space<vmem>>, vector<16x256xbf16>
      tpu.vector_store %arg5[%c0_25, %c0_26], %41 {strides = array<i32>} : memref<16x256xbf16, #tpu.memory_space<vmem>>, vector<16x256xbf16>,
    } else {
    }
    return
  }
  func.func @transform_0(%arg0: i32, %arg1: i32) -> (i32, i32) {
    %c0_i32 = arith.constant 0 : i32
    %c0_i32_0 = arith.constant 0 : i32
    return %arg0, %c0_i32 : i32, i32
  }
  func.func @transform_1(%arg0: i32, %arg1: i32) -> (i32, i32) {
    %c0_i32 = arith.constant 0 : i32
    %c0_i32_0 = arith.constant 0 : i32
    return %c0_i32, %arg1 : i32, i32
  }
  func.func @transform_2(%arg0: i32, %arg1: i32) -> (i32, i32) {
    %c0_i32 = arith.constant 0 : i32
    %c0_i32_0 = arith.constant 0 : i32
    return %c0_i32, %arg1 : i32, i32
  }
  func.func @transform_3(%arg0: i32, %arg1: i32) -> (i32, i32) {
    %c0_i32 = arith.constant 0 : i32
    %c0_i32_0 = arith.constant 0 : i32
    return %arg0, %c0_i32 : i32, i32
  }
}

</mosaic_0001>

<bundles_post_ra>
// kernel: tpu_custom_call.1
= control target key start
LH: loop header
LB: loop body
LE: loop exit
PB: predicated region body
PF: predicated region fallthrough
CT: control target
= control target key end

     0   :  { %8 = vsyncpa [#allocation5], 0  ;;  %s508_s0 = inlined_call_operand.hbm [shape: bf16[16,32], index: 0, kind: input, shape index: {}]   ;;  %s509_s1 = inlined_call_operand.hbm [shape: bf16[32,256], index: 1, kind: input, shape index: {}]   ;;  %s510_s2 = inlined_call_operand.vmem [shape: f32[1,256], index: 2, kind: input, shape index: {}]   ;;  %s511_s3 = inlined_call_operand.hbm [shape: bf16[16,256], index: 3, kind: output, shape index: {}]  }
   0x1   :  { %9 = vsyncpa [#allocation8], 0 }
   0x2   :  { %10 = vsyncpa [#allocation6], 0  ;;  %s405_s12 = smov [#allocation4]   ;;  %s333_s16 = scalar_lea.hbm %s508_s0, 128 }
   0x3   :  { %s16_s13 = sshll.u32 %s405_s12, 4  ;;  %p334_p0 = scmp.ne.s32.totalorder %s508_s0, %s333_s16  ;;  %s17_s13 = int_to_ptr.vmem [resolvable:$true] %s16_s13 }
   0x4   :  { %p337_p1 = scmp.lt.u32.totalorder %s333_s16, %s508_s0 }
   0x6   :  { %p339_p2 = pnand %p337_p1, %p334_p0 }
   0x8   :  { %342 = shalt.err (!%p339_p2)
}
   0x9   :  { %s343_s21 = scalar_lea.vmem %s17_s13, 128  ;;  %p348_p4 = scmp.lt.s32.totalorder %s17_s13, %s17_s13 }
   0xa   :  { %p344_p3 = scmp.ne.s32.totalorder %s17_s13, %s343_s21  ;;  %p349_p5 = scmp.lt.s32.totalorder %s343_s21, %s343_s21 }
   0xc   :  { %p350_p6 = por %p349_p5, %p348_p4 }
   0xe   :  { %p351_p7 = pnand %p350_p6, %p344_p3 }
  0x10   :  { %354 = shalt.err (!%p351_p7)
}
  0x11   :  { %s406_s22 = smov 64   ;;  %s407_s23 = smov 4  }
  0x12   :  { %22 = dma.hbm_to_vmem [thread:$0]  %s508_s0, 128, %s17_s13, [#allocation5], %s406_s22, %s406_s22, %s407_s23  }
  0x13   :  { %s408_s26 = smov [#allocation7]   ;;  %s355_s30 = scalar_lea.hbm %s509_s1, 512 }
  0x14   :  { %s28_s27 = sshll.u32 %s408_s26, 4  ;;  %p356_p8 = scmp.ne.s32.totalorder %s509_s1, %s355_s30  ;;  %s29_s27 = int_to_ptr.vmem [resolvable:$true] %s28_s27 }
  0x15   :  { %p359_p9 = scmp.lt.u32.totalorder %s355_s30, %s509_s1 }
  0x17   :  { %p361_p10 = pnand %p359_p9, %p356_p8 }
  0x19   :  { %364 = shalt.err (!%p361_p10)
}
  0x1a   :  { %s365_s8 = scalar_lea.vmem %s29_s27, 512  ;;  %p370_p12 = scmp.lt.s32.totalorder %s29_s27, %s29_s27 }
  0x1b   :  { %p366_p11 = scmp.ne.s32.totalorder %s29_s27, %s365_s8  ;;  %p371_p13 = scmp.lt.s32.totalorder %s365_s8, %s365_s8 }
  0x1d   :  { %p372_p0 = por %p371_p13, %p370_p12 }
  0x1f   :  { %p373_p1 = pnand %p372_p0, %p366_p11 }
  0x21   :  { %376 = shalt.err (!%p373_p1)
}
  0x22   :  { %s409_s0 = smov 128   ;;  %s410_s9 = smov 8  }
  0x23   :  { %34 = dma.hbm_to_vmem [thread:$0]  %s509_s1, 512, %s29_s27, [#allocation8], %s409_s0, %s409_s0, %s410_s9  }
  0x24   :  { %399 = dma.done.wait [#allocation5], 128  }
  0x25   :  { %400 = vsyncadd [#allocation5], 4294967168 }
  0x26   :  { %401 = dma.done.wait [#allocation8], 512  }
  0x27   :  { %402 = vsyncadd [#allocation8], 4294966784  ;;  %v411_v0 = vmov 0   ;;  %v310_v1 = vld [vmem:[#allocation7 + $0x4] ss:$8 sps:$4 sm:$0xff]   ;;  %v316_v5 = vld [vmem:[#allocation4] sm:$0xff]   ;;  %v61_v7 = vlaneseq }
  0x28   :  { %132 = vmatprep.mubr.bf16.mxu0 %v411_v0  ;;  %308 = vset.pattern.permute.xlu1 %v411_v0  ;;  %v312_v2 = vld [vmem:[#allocation7] ss:$8 sps:$4 sm:$0xff]   ;;  %v313_v3 = vld [vmem:[#allocation7 + $0x14] ss:$8 sps:$4 sm:$0xff]   ;;  %v315_v4 = vld [vmem:[#allocation7 + $0x10] ss:$8 sps:$4 sm:$0xff]  }
  0x29   :  { %309 = vset.pattern.permute.xlu0 %v411_v0  ;;  %100 = vmatprep.subr.bf16.mxu0 %v310_v1  ;;  %vm96_vm0 = vcmask 261120   ;;  %vm48_vm1 = vcmask 7168   ;;  %v412_v6 = vmov -inf   ;;  %v62_v8 = vshrl.u32 %v61_v7, 7  ;;  %v59_v10 = vld [vmem:[%s510_s2] sm:$0x3] }
  0x2a   :  { %101 = vmatpush1.bf16.msra.mxu0 %v312_v2  ;;  %49 = vst.msk [vmem:[#allocation2] sm:$0xff] %vm48_vm1, %v412_v6  ;;  %50 = vst.msk [vmem:[#allocation2 + $0x8] sm:$0xff] %vm48_vm1, %v412_v6  ;;  %v413_v24 = vmov 0.0   ;;  %s414_s2 = smov [#allocation9]  }
  0x2b   :  { %102 = vmatprep.subr.bf16.mxu0 %v313_v3  ;;  %v63_v9 = vsub.s32 0, %v62_v8  ;;  %v67_v11 = vsub.s32 1, %v62_v8  ;;  %51 = vst.msk [vmem:[#allocation3] sm:$0xff] %vm48_vm1, %v413_v24  ;;  %52 = vst.msk [vmem:[#allocation3 + $0x8] sm:$0xff] %vm48_vm1, %v413_v24  ;;  %s269_s13 = sshll.u32 %s414_s2, 4  ;;  %s270_s13 = int_to_ptr.vmem [resolvable:$true] %s269_s13 }
  0x2c   :  { %s377_s14 = scalar_lea.vmem %s270_s13, 256  ;;  %p382_p3 = scmp.lt.s32.totalorder %s270_s13, %s270_s13 }
  0x2d   :  { %v64_v12 = vrot.slane %v59_v10, %v63_v9  ;;  %v68_v13 = vrot.slane %v59_v10, %v67_v11  ;;  %p378_p2 = scmp.ne.s32.totalorder %s270_s13, %s377_s14  ;;  %p383_p4 = scmp.lt.s32.totalorder %s377_s14, %s377_s14 }
  0x2e   :  { %103 = vmatpush1.bf16.msra.mxu0 %v315_v4 }
  0x2f   :  { %p384_p5 = por %p383_p4, %p382_p3 }
  0x31   :  { %289 = vmatmul.mubr.msk.bf16.vlgmr.msra.gmra.mrb[0].mxu0 %vm96_vm0, %v316_v5  ;;  %v162_v25 = vld [vmem:[#allocation2] sm:$0xff]  ;;  %v163_v28 = vld [vmem:[#allocation2 + $0x8] sm:$0xff]  ;;  %p385_p6 = pnand %p384_p5, %p378_p2 }
  0x32   :  { %v172_v52 = vld [vmem:[#allocation3] sm:$0xff]  ;;  %v173_v56 = vld [vmem:[#allocation3 + $0x8] sm:$0xff] }
 0x104   :  { %v134_v14 = vpop.f32.mrb[0].mxu0 }
 0x105   :  { %v467_v15 = vadd.f32 %v134_v14, %v64_v12  ;;  %v136_v16 = vpop.f32.mrb[1].mxu0 }
 0x106   :  { %v469_v17 = vadd.f32 %v136_v16, %v68_v13  ;;  %v138_v18 = vpop.f32.mrb[2].mxu0 }
 0x107   :  { %v140_v19 = vpop.f32.mrb[3].mxu0  ;;  %v471_v20 = vadd.f32 %v138_v18, %v64_v12 }
 0x108   :  { %v473_v21 = vadd.f32 %v140_v19, %v68_v13  ;;  %v164_v22 = vmax.f32 %v467_v15, %v469_v17  ;;  %v294_v7 = vpack.c.bf16 %v469_v17, %v467_v15 }
 0x10a   :  { %165 = vmax.xlane.f32.xlu0 %v164_v22  ;;  %v167_v23 = vmax.f32 %v471_v20, %v473_v21  ;;  %v295_v8 = vpack.c.bf16 %v473_v21, %v471_v20  ;;  %v232_v9 = vunpack.c.l.bf16 %v294_v7  ;;  %v233_v10 = vunpack.c.h.bf16 %v294_v7 }
 0x10c   :  { %v234_v16 = vunpack.c.l.bf16 %v295_v8  ;;  %v235_v18 = vunpack.c.h.bf16 %v295_v8 }
 0x10e   :  { %168 = vmax.xlane.f32.xlu0 %v167_v23 }
 0x197   :  { %v166_v26 = vpop.xlane.xlu0 %165 }
 0x198   :  { %v170_v27 = vmax.f32 %v162_v25, %v166_v26 }
 0x19a   :  { %v174_v29 = vsub.f32 %v162_v25, %v170_v27  ;;  %215 = vst.msk [vmem:[#allocation2] sm:$0xff] %vm48_vm1, %v170_v27  ;;  %184 = vperm.xlu1 %308, %v170_v27  }
 0x19b   :  { %v169_v30 = vpop.xlane.xlu0 %168 }
 0x19c   :  { %v171_v31 = vmax.f32 %v163_v28, %v169_v30  ;;  %v176_v49 = vmul.f32 1.442695, %v174_v29 }
 0x19e   :  { %v175_v32 = vsub.f32 %v163_v28, %v171_v31  ;;  %216 = vst.msk [vmem:[#allocation2 + $0x8] sm:$0xff] %vm48_vm1, %v171_v31  ;;  %189 = vperm.xlu1 %308, %v171_v31  }
 0x1a0   :  { %v178_v50 = vmul.f32 1.442695, %v175_v32 }
 0x1a1   :  { %v220_v1 = vld [vmem:[#allocation2] sm:$0xff] }
 0x1a5   :  { %v221_v5 = vld [vmem:[#allocation2 + $0x8] sm:$0xff] }
 0x219   :  { %v185_v33 = vpop.permute.xlu1 %184 }
 0x21a   :  { %v192_v34 = vsub.f32 %v467_v15, %v185_v33  ;;  %v193_v35 = vsub.f32 %v469_v17, %v185_v33 }
 0x21c   :  { %v196_v36 = vmul.f32 1.442695, %v192_v34  ;;  %v198_v37 = vmul.f32 1.442695, %v193_v35 }
 0x21d   :  { %v190_v38 = vpop.permute.xlu1 %189 }
 0x21e   :  { %317 = vpow2.f32 %v196_v36  ;;  %v194_v39 = vsub.f32 %v471_v20, %v190_v38  ;;  %v195_v40 = vsub.f32 %v473_v21, %v190_v38 }
 0x21f   :  { %319 = vpow2.f32 %v198_v37 }
 0x220   :  { %v200_v41 = vmul.f32 1.442695, %v194_v39  ;;  %v202_v42 = vmul.f32 1.442695, %v195_v40 }
 0x222   :  { %321 = vpow2.f32 %v200_v41 }
 0x223   :  { %323 = vpow2.f32 %v202_v42 }
 0x224   :  { %325 = vpow2.f32 %v176_v49 }
 0x225   :  { %327 = vpow2.f32 %v178_v50 }
 0x228   :  { %v318_v43 = vpop.eup %317 }
 0x229   :  { %v320_v44 = vpop.eup %319 }
 0x22a   :  { %v204_v45 = vadd.f32 %v320_v44, %v318_v43 }
 0x22c   :  { %v322_v46 = vpop.eup %321  ;;  %205 = vadd.xlane.f32.xlu0 %v204_v45 }
 0x22d   :  { %v324_v47 = vpop.eup %323 }
 0x22e   :  { %v207_v48 = vadd.f32 %v324_v47, %v322_v46  ;;  %v326_v51 = vpop.eup %325 }
 0x22f   :  { %v180_v53 = vmul.f32 %v326_v51, %v172_v52  ;;  %v328_v54 = vpop.eup %327 }
 0x230   :  { %208 = vadd.xlane.f32.xlu1 %v207_v48  ;;  %v181_v58 = vmul.f32 %v328_v54, %v173_v56 }
 0x2b9   :  { %v206_v55 = vpop.xlane.xlu0 %205 }
 0x2ba   :  { %v210_v57 = vadd.f32 %v206_v55, %v180_v53 }
 0x2bc   :  { %213 = vst.msk [vmem:[#allocation3] sm:$0xff] %vm48_vm1, %v210_v57 }
 0x2bd   :  { %v209_v59 = vpop.xlane.xlu1 %208 }
 0x2be   :  { %v211_v60 = vadd.f32 %v209_v59, %v181_v58 }
 0x2c0   :  { %214 = vst.msk [vmem:[#allocation3 + $0x8] sm:$0xff] %vm48_vm1, %v211_v60 }
 0x2c3   :  { %v222_v61 = vld [vmem:[#allocation3] sm:$0xff] }
 0x2c4   :  { %329 = vlog2.f32 %v222_v61 }
 0x2c7   :  { %v223_v62 = vld [vmem:[#allocation3 + $0x8] sm:$0xff] }
 0x2c8   :  { %331 = vlog2.f32 %v223_v62 }
 0x2ce   :  { %v330_v63 = vpop.eup %329 }
 0x2cf   :  { %v225_v0 = vmul.f32 0.6931472, %v330_v63 }
 0x2d1   :  { %v228_v2 = vadd.f32 %v225_v0, %v220_v1 }
 0x2d2   :  { %v332_v3 = vpop.eup %331 }
 0x2d3   :  { %238 = vperm.xlu0 %309, %v228_v2   ;;  %v227_v4 = vmul.f32 0.6931472, %v332_v3 }
 0x2d5   :  { %v229_v6 = vadd.f32 %v227_v4, %v221_v5 }
 0x2d7   :  { %243 = vperm.xlu1 %308, %v229_v6  }
 0x352   :  { %v239_v11 = vpop.permute.xlu0 %238 }
 0x353   :  { %v246_v12 = vsub.f32 %v232_v9, %v239_v11  ;;  %v247_v13 = vsub.f32 %v233_v10, %v239_v11 }
 0x355   :  { %v296_v14 = vpack.c.bf16 %v247_v13, %v246_v12 }
 0x356   :  { %v244_v19 = vpop.permute.xlu1 %243 }
 0x357   :  { %262 = vst [vmem:[#allocation9] sm:$0xff] %v296_v14  ;;  %v248_v22 = vsub.f32 %v234_v16, %v244_v19  ;;  %v249_v23 = vsub.f32 %v235_v18, %v244_v19 }
 0x359   :  { %v297_v24 = vpack.c.bf16 %v249_v23, %v248_v22 }
 0x35b   :  { %263 = vst [vmem:[#allocation9 + $0x8] sm:$0xff] %v297_v24 }
 0x35c   :  { %388 = shalt.err (!%p385_p6)
}
 0x35d   :  { %s389_s17 = scalar_lea.hbm %s511_s3, 256 }
 0x35e   :  { %p390_p7 = scmp.ne.s32.totalorder %s511_s3, %s389_s17  ;;  %p393_p8 = scmp.lt.u32.totalorder %s389_s17, %s511_s3 }
 0x360   :  { %p395_p9 = pnand %p393_p8, %p390_p7 }
 0x362   :  { %398 = shalt.err (!%p395_p9)
}
 0x363   :  { %275 = dma.vmem_to_hbm [thread:$0]  %s270_s13, 256, %s511_s3, [#allocation6], %s409_s0, %s409_s0, %s410_s9  }
 0x364   :  { %403 = dma.done.wait [#allocation6], 256  }
 0x365   :  { %404 = vsyncadd [#allocation6], 4294967040 }
 0x366   :  { %279 = vsyncpa [#allocation5], 1 }
 0x367   :  { %280 = vsyncpa [#allocation8], 1 }
 0x368   :  { %281 = vsyncpa [#allocation6], 1 }

</bundles_post_ra>
